<compile_context>
chip_gen: v5e
topology: v5e:2x2
jax: 0.10.0
libtpu: 0.0.40
codegen_flags: <defaults>
</compile_context>

<pallas_src>
import functools

import jax
import jax.numpy as jnp
from jax.experimental import pallas as pl
from jax.experimental.pallas import tpu as pltpu


def _leaky_relu(x, slope=0.01):
    # Equivalent to where(x>0, x, slope*x) for slope in [0, 1]; 2 VALU ops.
    return jnp.maximum(x, slope * x)


def fc_t_kernel(x_ref, w1_ref, b1_ref, w2_ref, b2_ref, w3_ref, b3_ref,
                wc_ref, bc_ref, o_ref, *, seq_len):
    # x_ref block: (TB*seq_len, 128) -- host-flattened, sublane-dense rows.
    M, D = x_ref.shape
    TB = M // seq_len
    md = w1_ref.dtype                              # matmul operand dtype

    x2d = x_ref[...]                               # (M, 128), f32 or bf16

    # embed: 3 x [Linear(128,128) -> Dropout(id) -> LeakyReLU]
    # Weights pre-transposed to (in, out); canonical [M,K]@[K,N] dots, f32 acc.
    h = x2d
    h = _leaky_relu(
        jnp.dot(h.astype(md), w1_ref[...], preferred_element_type=jnp.float32)
        + b1_ref[...])
    h = _leaky_relu(
        jnp.dot(h.astype(md), w2_ref[...], preferred_element_type=jnp.float32)
        + b2_ref[...])
    h = _leaky_relu(
        jnp.dot(h.astype(md), w3_ref[...], preferred_element_type=jnp.float32)
        + b3_ref[...])

    # residual add + SUM over the sequence axis (the 1/S of the mean is folded
    # into the classifier weight on the host).  Layout no-op when S % 8 == 0.
    summed = (h + x2d.astype(jnp.float32)).reshape(TB, seq_len, D).sum(axis=1)

    # classifier: Linear(128, 20) padded to 128 lane-dense output columns.
    logits = (jnp.dot(summed.astype(md), wc_ref[...],
                      preferred_element_type=jnp.float32)
              + bc_ref[...])                                  # (TB, 128)
    o_ref[...] = jax.nn.sigmoid(logits)


def _choose_tb(B, S, target_rows=2048):
    """Rows per grid step = TB*S; aim for ~2048 rows, TB a multiple of 8."""
    tb = max(1, target_rows // max(S, 1))
    tb = ((tb + 7) // 8) * 8
    b8 = ((B + 7) // 8) * 8
    tb = min(tb, b8)
    # Prefer >=2 grid steps when the batch allows it (feeds both v7x cores).
    if tb >= b8 and b8 >= 16:
        tb = ((b8 // 2 + 7) // 8) * 8
    return max(tb, 8)


def fc_t_forward(x, params, matmul_dtype=jnp.float32):
    """x: (B, S, 128) float32. Returns (B, 20) float32.

    matmul_dtype=jnp.bfloat16 recommended on v6e/v7x (x and weights DMA'd as
    bf16, f32 accumulation); default f32 matches the PyTorch math closely and
    is the right path on v5e (no bf16 VPU/EUP).
    """
    B, S, D = x.shape
    assert D == 128
    w1, b1, w2, b2, w3, b3, wc, bc = params

    # --- host-side parameter repacking (once, outside the kernel) ---
    md = matmul_dtype
    w1t = w1.T.astype(md)                      # (128, 128) = (in, out)
    w2t = w2.T.astype(md)
    w3t = w3.T.astype(md)
    # classifier padded to 128 lane-dense output columns, 1/S of mean folded in
    wct = jnp.zeros((128, 128), md).at[:, :20].set(
        (wc.T / jnp.float32(S)).astype(md))
    b1r = b1.reshape(1, 128).astype(jnp.float32)
    b2r = b2.reshape(1, 128).astype(jnp.float32)
    b3r = b3.reshape(1, 128).astype(jnp.float32)
    bcr = jnp.zeros((1, 128), jnp.float32).at[0, :20].set(bc.astype(jnp.float32))

    # --- batch tiling: TB batch elements per grid step ---
    TB = _choose_tb(B, S)
    num_steps = pl.cdiv(B, TB)
    if num_steps > 1 and num_steps % 2 == 1:
        num_steps += 1                         # even step count for v7x 2 TCs
    B_pad = num_steps * TB
    if B_pad != B:
        x = jnp.pad(x, ((0, B_pad - B), (0, 0), (0, 0)))

    # Host-side flatten -> sublane-dense (TB*S, 128) blocks, no in-kernel copy.
    x_dtype = md if md == jnp.bfloat16 else jnp.float32
    x_flat = x.reshape(B_pad * S, D).astype(x_dtype)

    grid = (num_steps,)
    full2d = lambda shape: pl.BlockSpec(shape, lambda b: (0, 0))

    flops = 2 * B_pad * S * D * D * 3 + 2 * B_pad * D * D
    bytes_accessed = (B_pad * S * D * jnp.dtype(x_dtype).itemsize
                      + 4 * D * D * jnp.dtype(md).itemsize
                      + 4 * D * 4
                      + B_pad * D * 4)
    cost = pl.CostEstimate(flops=flops,
                           transcendentals=B_pad * D,
                           bytes_accessed=bytes_accessed)

    out = pl.pallas_call(
        functools.partial(fc_t_kernel, seq_len=S),
        out_shape=jax.ShapeDtypeStruct((B_pad, 128), jnp.float32),
        grid_spec=pltpu.PrefetchScalarGridSpec(
            num_scalar_prefetch=0,
            grid=grid,
            in_specs=[
                pl.BlockSpec((TB * S, D), lambda b: (b, 0)),     # X slab
                full2d((128, 128)), full2d((1, 128)),            # layer 1
                full2d((128, 128)), full2d((1, 128)),            # layer 2
                full2d((128, 128)), full2d((1, 128)),            # layer 3
                full2d((128, 128)), full2d((1, 128)),            # classifier
            ],
            out_specs=pl.BlockSpec((TB, 128), lambda b: (b, 0)),
        ),
        compiler_params=pltpu.CompilerParams(
            dimension_semantics=("parallel",),
            vmem_limit_bytes=32 * 1024 * 1024),
        cost_estimate=cost,
    )(x_flat, w1t, b1r, w2t, b2r, w3t, b3r, wct, bcr)

    # TODO(synk): if the caller can consume the padded (B_pad,128) array, fuse
    # this slice downstream instead of materializing it.
    return out[:B, :20]


def init_params(key):
    """Deterministic xavier-normal weights, zero biases (matches __init__)."""
    def xavier_normal(key, out_f, in_f):
        std = (2.0 / (in_f + out_f)) ** 0.5
        return std * jax.random.normal(key, (out_f, in_f), dtype=jnp.float32)

    k1, k2, k3, kc = jax.random.split(key, 4)
    w1 = xavier_normal(k1, 128, 128); b1 = jnp.zeros((128,), jnp.float32)
    w2 = xavier_normal(k2, 128, 128); b2 = jnp.zeros((128,), jnp.float32)
    w3 = xavier_normal(k3, 128, 128); b3 = jnp.zeros((128,), jnp.float32)
    wc = xavier_normal(kc, 20, 128);  bc = jnp.zeros((20,), jnp.float32)
    return (w1, b1, w2, b2, w3, b3, wc, bc)


def fc_t_reference(x, params):
    # Dropout layers are identity at inference.
    w1, b1, w2, b2, w3, b3, wc, bc = params
    lrelu = lambda v: jnp.where(v > 0, v, 0.01 * v)
    h = x
    h = lrelu(h @ w1.T + b1)
    h = lrelu(h @ w2.T + b2)
    h = lrelu(h @ w3.T + b3)
    pooled = (h + x).mean(axis=1)
    return jax.nn.sigmoid(pooled @ wc.T + bc)


if __name__ == "__main__":
    key = jax.random.PRNGKey(0)
    kx, kp = jax.random.split(key)

    B, S, D = 2, 8, 128
    x = jax.random.normal(kx, (B, S, D), dtype=jnp.float32)
    params = init_params(kp)

    ref = fc_t_reference(x, params)

    # f32 operand path (exact-ish): default, also the right path on v5e.
    out = jax.block_until_ready(fc_t_forward(x, params))
    assert out.shape == (B, 20)
    assert jnp.allclose(out, ref, atol=1e-5, rtol=1e-5)

    # bf16-operand + bf16-x path (recommended on v6e/v7x); f32 accumulation.
    out_bf16 = jax.block_until_ready(
        fc_t_forward(x, params, matmul_dtype=jnp.bfloat16))
    assert out_bf16.shape == (B, 20)
    assert jnp.allclose(out_bf16, ref, atol=2e-2, rtol=2e-2)

    print("KERNEL_OK")
</pallas_src>

<mosaic_0001>
module attributes {stable_mosaic.version = 11 : i64} {
  func.func @fc_t_kernel(%arg0: i32, %arg1: memref<64x128xf32, #tpu.memory_space<vmem>>, %arg2: memref<128x128xf32, #tpu.memory_space<vmem>>, %arg3: memref<1x128xf32, #tpu.memory_space<vmem>>, %arg4: memref<128x128xf32, #tpu.memory_space<vmem>>, %arg5: memref<1x128xf32, #tpu.memory_space<vmem>>, %arg6: memref<128x128xf32, #tpu.memory_space<vmem>>, %arg7: memref<1x128xf32, #tpu.memory_space<vmem>>, %arg8: memref<128x128xf32, #tpu.memory_space<vmem>>, %arg9: memref<1x128xf32, #tpu.memory_space<vmem>>, %arg10: memref<8x128xf32, #tpu.memory_space<vmem>>) attributes {dimension_semantics = [#tpu.dimension_semantics<parallel>], iteration_bounds = array<i64: 1>, scalar_prefetch = 0 : i64, scratch_operands = 0 : i64, tpu.core_type = #tpu.core_type<tc>, window_params = [{transform_indices = @transform_0, window_bounds = array<i64: 64, 128>}, {pipeline_mode = #tpu.pipeline_mode<synchronous>, transform_indices = @transform_1, window_bounds = array<i64: 128, 128>}, {pipeline_mode = #tpu.pipeline_mode<synchronous>, transform_indices = @transform_2, window_bounds = array<i64: 1, 128>}, {pipeline_mode = #tpu.pipeline_mode<synchronous>, transform_indices = @transform_3, window_bounds = array<i64: 128, 128>}, {pipeline_mode = #tpu.pipeline_mode<synchronous>, transform_indices = @transform_4, window_bounds = array<i64: 1, 128>}, {pipeline_mode = #tpu.pipeline_mode<synchronous>, transform_indices = @transform_5, window_bounds = array<i64: 128, 128>}, {pipeline_mode = #tpu.pipeline_mode<synchronous>, transform_indices = @transform_6, window_bounds = array<i64: 1, 128>}, {pipeline_mode = #tpu.pipeline_mode<synchronous>, transform_indices = @transform_7, window_bounds = array<i64: 128, 128>}, {pipeline_mode = #tpu.pipeline_mode<synchronous>, transform_indices = @transform_8, window_bounds = array<i64: 1, 128>}, {transform_indices = @transform_9, window_bounds = array<i64: 8, 128>}]} {
    %c0 = arith.constant 0 : index
    %c0_0 = arith.constant 0 : index
    %0 = vector.load %arg1[%c0, %c0_0] : memref<64x128xf32, #tpu.memory_space<vmem>>, vector<64x128xf32>
    %c0_1 = arith.constant 0 : index
    %c0_2 = arith.constant 0 : index
    %1 = vector.load %arg2[%c0_1, %c0_2] : memref<128x128xf32, #tpu.memory_space<vmem>>, vector<128x128xf32>
    %cst = arith.constant dense<0.000000e+00> : vector<64x128xf32>
    %2 = tpu.matmul %0, %1, %cst {dimension_numbers = #tpu.dot_dimension_numbers<[1], [0], [0], [1], [0, 0, 1, 1], [], []>} : vector<64x128xf32>, vector<128x128xf32>, vector<64x128xf32> -> vector<64x128xf32>
    %c0_3 = arith.constant 0 : index
    %c0_4 = arith.constant 0 : index
    %3 = vector.load %arg3[%c0_3, %c0_4] : memref<1x128xf32, #tpu.memory_space<vmem>>, vector<1x128xf32>
    %4 = vector.broadcast %3 : vector<1x128xf32> to vector<64x128xf32>
    %5 = arith.addf %2, %4 : vector<64x128xf32>
    %cst_5 = arith.constant 0.00999999977 : f32
    %6 = vector.broadcast %cst_5 : f32 to vector<64x128xf32>
    %7 = arith.mulf %6, %5 : vector<64x128xf32>
    %8 = arith.maximumf %5, %7 : vector<64x128xf32>
    %c0_6 = arith.constant 0 : index
    %c0_7 = arith.constant 0 : index
    %9 = vector.load %arg4[%c0_6, %c0_7] : memref<128x128xf32, #tpu.memory_space<vmem>>, vector<128x128xf32>
    %cst_8 = arith.constant dense<0.000000e+00> : vector<64x128xf32>
    %10 = tpu.matmul %8, %9, %cst_8 {dimension_numbers = #tpu.dot_dimension_numbers<[1], [0], [0], [1], [0, 0, 1, 1], [], []>} : vector<64x128xf32>, vector<128x128xf32>, vector<64x128xf32> -> vector<64x128xf32>
    %c0_9 = arith.constant 0 : index
    %c0_10 = arith.constant 0 : index
    %11 = vector.load %arg5[%c0_9, %c0_10] : memref<1x128xf32, #tpu.memory_space<vmem>>, vector<1x128xf32>
    %12 = vector.broadcast %11 : vector<1x128xf32> to vector<64x128xf32>
    %13 = arith.addf %10, %12 : vector<64x128xf32>
    %cst_11 = arith.constant 0.00999999977 : f32
    %14 = vector.broadcast %cst_11 : f32 to vector<64x128xf32>
    %15 = arith.mulf %14, %13 : vector<64x128xf32>
    %16 = arith.maximumf %13, %15 : vector<64x128xf32>
    %c0_12 = arith.constant 0 : index
    %c0_13 = arith.constant 0 : index
    %17 = vector.load %arg6[%c0_12, %c0_13] : memref<128x128xf32, #tpu.memory_space<vmem>>, vector<128x128xf32>
    %cst_14 = arith.constant dense<0.000000e+00> : vector<64x128xf32>
    %18 = tpu.matmul %16, %17, %cst_14 {dimension_numbers = #tpu.dot_dimension_numbers<[1], [0], [0], [1], [0, 0, 1, 1], [], []>} : vector<64x128xf32>, vector<128x128xf32>, vector<64x128xf32> -> vector<64x128xf32>
    %c0_15 = arith.constant 0 : index
    %c0_16 = arith.constant 0 : index
    %19 = vector.load %arg7[%c0_15, %c0_16] : memref<1x128xf32, #tpu.memory_space<vmem>>, vector<1x128xf32>
    %20 = vector.broadcast %19 : vector<1x128xf32> to vector<64x128xf32>
    %21 = arith.addf %18, %20 : vector<64x128xf32>
    %cst_17 = arith.constant 0.00999999977 : f32
    %22 = vector.broadcast %cst_17 : f32 to vector<64x128xf32>
    %23 = arith.mulf %22, %21 : vector<64x128xf32>
    %24 = arith.maximumf %21, %23 : vector<64x128xf32>
    %25 = arith.addf %24, %0 : vector<64x128xf32>
    %26 = vector.shape_cast %25 : vector<64x128xf32> to vector<8x8x128xf32>
    %cst_18 = arith.constant dense<0.000000e+00> : vector<8x128xf32>
    %27 = vector.multi_reduction <add>, %26, %cst_18 [1] : vector<8x8x128xf32> to vector<8x128xf32>
    %c0_19 = arith.constant 0 : index
    %c0_20 = arith.constant 0 : index
    %28 = vector.load %arg8[%c0_19, %c0_20] : memref<128x128xf32, #tpu.memory_space<vmem>>, vector<128x128xf32>
    %cst_21 = arith.constant dense<0.000000e+00> : vector<8x128xf32>
    %29 = tpu.matmul %27, %28, %cst_21 {dimension_numbers = #tpu.dot_dimension_numbers<[1], [0], [0], [1], [0, 0, 1, 1], [], []>} : vector<8x128xf32>, vector<128x128xf32>, vector<8x128xf32> -> vector<8x128xf32>
    %c0_22 = arith.constant 0 : index
    %c0_23 = arith.constant 0 : index
    %30 = vector.load %arg9[%c0_22, %c0_23] : memref<1x128xf32, #tpu.memory_space<vmem>>, vector<1x128xf32>
    %31 = vector.broadcast %30 : vector<1x128xf32> to vector<8x128xf32>
    %32 = arith.addf %29, %31 : vector<8x128xf32>
    %33 = arith.negf %32 : vector<8x128xf32>
    %34 = math.exp %33 : vector<8x128xf32>
    %cst_24 = arith.constant 1.000000e+00 : f32
    %35 = vector.broadcast %cst_24 : f32 to vector<8x128xf32>
    %36 = arith.addf %35, %34 : vector<8x128xf32>
    %37 = arith.divf %35, %36 : vector<8x128xf32>
    %c0_25 = arith.constant 0 : index
    %c0_26 = arith.constant 0 : index
    %38 = vector.load %arg10[%c0_25, %c0_26] : memref<8x128xf32, #tpu.memory_space<vmem>>, vector<8x128xf32>
    tpu.vector_store %arg10[%c0_25, %c0_26], %37 {strides = array<i32>} : memref<8x128xf32, #tpu.memory_space<vmem>>, vector<8x128xf32>,
    return
  }
  func.func @transform_0(%arg0: i32) -> (i32, i32) {
    %c0_i32 = arith.constant 0 : i32
    %c0_i32_0 = arith.constant 0 : i32
    return %arg0, %c0_i32 : i32, i32
  }
  func.func @transform_1(%arg0: i32) -> (i32, i32) {
    %c0_i32 = arith.constant 0 : i32
    %c0_i32_0 = arith.constant 0 : i32
    %c0_i32_1 = arith.constant 0 : i32
    return %c0_i32, %c0_i32_0 : i32, i32
  }
  func.func @transform_2(%arg0: i32) -> (i32, i32) {
    %c0_i32 = arith.constant 0 : i32
    %c0_i32_0 = arith.constant 0 : i32
    %c0_i32_1 = arith.constant 0 : i32
    return %c0_i32, %c0_i32_0 : i32, i32
  }
  func.func @transform_3(%arg0: i32) -> (i32, i32) {
    %c0_i32 = arith.constant 0 : i32
    %c0_i32_0 = arith.constant 0 : i32
    %c0_i32_1 = arith.constant 0 : i32
    return %c0_i32, %c0_i32_0 : i32, i32
  }
  func.func @transform_4(%arg0: i32) -> (i32, i32) {
    %c0_i32 = arith.constant 0 : i32
    %c0_i32_0 = arith.constant 0 : i32
    %c0_i32_1 = arith.constant 0 : i32
    return %c0_i32, %c0_i32_0 : i32, i32
  }
  func.func @transform_5(%arg0: i32) -> (i32, i32) {
    %c0_i32 = arith.constant 0 : i32
    %c0_i32_0 = arith.constant 0 : i32
    %c0_i32_1 = arith.constant 0 : i32
    return %c0_i32, %c0_i32_0 : i32, i32
  }
  func.func @transform_6(%arg0: i32) -> (i32, i32) {
    %c0_i32 = arith.constant 0 : i32
    %c0_i32_0 = arith.constant 0 : i32
    %c0_i32_1 = arith.constant 0 : i32
    return %c0_i32, %c0_i32_0 : i32, i32
  }
  func.func @transform_7(%arg0: i32) -> (i32, i32) {
    %c0_i32 = arith.constant 0 : i32
    %c0_i32_0 = arith.constant 0 : i32
    %c0_i32_1 = arith.constant 0 : i32
    return %c0_i32, %c0_i32_0 : i32, i32
  }
  func.func @transform_8(%arg0: i32) -> (i32, i32) {
    %c0_i32 = arith.constant 0 : i32
    %c0_i32_0 = arith.constant 0 : i32
    %c0_i32_1 = arith.constant 0 : i32
    return %c0_i32, %c0_i32_0 : i32, i32
  }
  func.func @transform_9(%arg0: i32) -> (i32, i32) {
    %c0_i32 = arith.constant 0 : i32
    %c0_i32_0 = arith.constant 0 : i32
    return %arg0, %c0_i32 : i32, i32
  }
}

</mosaic_0001>

<bundles_post_ra>
// kernel: tpu_custom_call.1
= control target key start
LH: loop header
LB: loop body
LE: loop exit
PB: predicated region body
PF: predicated region fallthrough
CT: control target
= control target key end

     0   :  { %14 = vsyncpa [#allocation3], 0  ;;  %s807_s0 = inlined_call_operand.hbm [shape: f32[64,128], index: 0, kind: input, shape index: {}]   ;;  %s808_s1 = inlined_call_operand.hbm [shape: f32[128,128], index: 1, kind: input, shape index: {}]   ;;  %s809_s2 = inlined_call_operand.vmem [shape: f32[1,128], index: 2, kind: input, shape index: {}]   ;;  %s810_s3 = inlined_call_operand.hbm [shape: f32[128,128], index: 3, kind: input, shape index: {}]   ;;  %s811_s4 = inlined_call_operand.vmem [shape: f32[1,128], index: 4, kind: input, shape index: {}]   ;;  %s812_s5 = inlined_call_operand.hbm [shape: f32[128,128], index: 5, kind: input, shape index: {}]   ;;  %s813_s6 = inlined_call_operand.vmem [shape: f32[1,128], index: 6, kind: input, shape index: {}]   ;;  %s814_s7 = inlined_call_operand.hbm [shape: f32[128,128], index: 7, kind: input, shape index: {}]   ;;  %s815_s8 = inlined_call_operand.vmem [shape: f32[1,128], index: 8, kind: input, shape index: {}]   ;;  %s816_s9 = inlined_call_operand.hbm [shape: f32[8,128], index: 9, kind: output, shape index: {}]  }
   0x1   :  { %15 = vsyncpa [#allocation6], 0 }
   0x2   :  { %16 = vsyncpa [#allocation9], 0 }
   0x3   :  { %17 = vsyncpa [#allocation4], 0  ;;  %s35_s11 = sshll.u32 %s808_s1, 4  ;;  %s677_s12 = smov [#allocation5]   ;;  %s36_s11 = int_to_ptr.hbm [resolvable:$true] %s35_s11 }
   0x4   :  { %s37_s13 = sshll.u32 %s677_s12, 4  ;;  %s65_s16 = sshll.u32 %s812_s5, 4  ;;  %s38_s13 = int_to_ptr.vmem [resolvable:$true] %s37_s13  ;;  %s66_s16 = int_to_ptr.hbm [resolvable:$true] %s65_s16 }
   0x5   :  { %s678_s17 = smov 128   ;;  %s679_s18 = smov 8  }
   0x6   :  { %43 = dma.hbm_to_vmem [thread:$0]  %s36_s11, 2048, %s38_s13, [#allocation6], %s678_s17, %s678_s17, %s679_s18  }
   0x7   :  { %s680_s19 = smov [#allocation8]   ;;  %s22_s23 = sshll.u32 %s807_s0, 4  ;;  %s23_s23 = int_to_ptr.hbm [resolvable:$true] %s22_s23 }
   0x8   :  { %s67_s20 = sshll.u32 %s680_s19, 4  ;;  %s50_s25 = sshll.u32 %s810_s3, 4  ;;  %s68_s20 = int_to_ptr.vmem [resolvable:$true] %s67_s20  ;;  %s51_s25 = int_to_ptr.hbm [resolvable:$true] %s50_s25 }
   0x9   :  { %73 = dma.hbm_to_vmem [thread:$0]  %s66_s16, 2048, %s68_s20, [#allocation9], %s678_s17, %s678_s17, %s679_s18  }
   0xa   :  { %s681_s26 = smov [#allocation2]   ;;  %s682_s5 = smov [#allocation7]  }
   0xb   :  { %s24_s27 = sshll.u32 %s681_s26, 4  ;;  %s52_s28 = sshll.u32 %s682_s5, 4  ;;  %s25_s27 = int_to_ptr.vmem [resolvable:$true] %s24_s27  ;;  %s53_s28 = int_to_ptr.vmem [resolvable:$true] %s52_s28 }
   0xc   :  { %30 = dma.hbm_to_vmem [thread:$0]  %s23_s23, 1024, %s25_s27, [#allocation3], %s678_s17, %s678_s17, %s679_s18  }
   0xd   :  { %s80_s10 = sshll.u32 %s814_s7, 4  ;;  %s683_s0 = smov [#allocation10]   ;;  %s81_s10 = int_to_ptr.hbm [resolvable:$true] %s80_s10 }
   0xe   :  { %58 = dma.hbm_to_vmem [thread:$0]  %s51_s25, 2048, %s53_s28, [#allocation6], %s678_s17, %s678_s17, %s679_s18  }
   0xf   :  { %s82_s11 = sshll.u32 %s683_s0, 4  ;;  %s83_s11 = int_to_ptr.vmem [resolvable:$true] %s82_s11 }
  0x10   :  { %88 = dma.hbm_to_vmem [thread:$0]  %s81_s10, 2048, %s83_s11, [#allocation9], %s678_s17, %s678_s17, %s679_s18  }
  0x11   :  { %669 = dma.done.wait [#allocation3], 1024  }
  0x12   :  { %670 = vsyncadd [#allocation3], 4294966272 }
  0x13   :  { %671 = dma.done.wait [#allocation6], 4096  }
  0x14   :  { %672 = vsyncadd [#allocation6], 4294963200 }
  0x15   :  { %673 = dma.done.wait [#allocation9], 4096  }
  0x16   :  { %674 = vsyncadd [#allocation9], 4294963200  ;;  %v134_v0 = vld [vmem:[#allocation5 + $0x78] sm:$0xff]  ;;  %v133_v1 = vld [vmem:[#allocation5 + $0x70] sm:$0xff]  ;;  %vm434_vm0 = vcmask 1041409   ;;  %vm436_vm1 = vcmask 1042434  }
  0x17   :  { %139 = vmatpush.msra.mxu0 %v134_v0  ;;  %v132_v2 = vld [vmem:[#allocation5 + $0x68] sm:$0xff]  ;;  %v131_v3 = vld [vmem:[#allocation5 + $0x60] sm:$0xff]  ;;  %v130_v4 = vld [vmem:[#allocation5 + $0x58] sm:$0xff]  ;;  %vm438_vm2 = vcmask 1043459   ;;  %vm440_vm3 = vcmask 1044484   ;;  %vm442_vm4 = vcmask 1045509  }
  0x18   :  { %v129_v5 = vld [vmem:[#allocation5 + $0x50] sm:$0xff]  ;;  %v128_v6 = vld [vmem:[#allocation5 + $0x48] sm:$0xff]  ;;  %v127_v7 = vld [vmem:[#allocation5 + $0x40] sm:$0xff]  ;;  %vm444_vm5 = vcmask 1046534   ;;  %vm446_vm6 = vcmask 1047559   ;;  %s684_s15 = smov [#allocation11]  }
  0x19   :  { %140 = vmatpush.msra.mxu0 %v133_v1  ;;  %v126_v8 = vld [vmem:[#allocation5 + $0x38] sm:$0xff]  ;;  %v125_v9 = vld [vmem:[#allocation5 + $0x30] sm:$0xff]  ;;  %v124_v10 = vld [vmem:[#allocation5 + $0x28] sm:$0xff]  ;;  %s494_s16 = sshll.u32 %s684_s15, 4  ;;  %s495_s16 = int_to_ptr.vmem [resolvable:$true] %s494_s16 }
  0x1a   :  { %v123_v11 = vld [vmem:[#allocation5 + $0x20] sm:$0xff]  ;;  %v122_v12 = vld [vmem:[#allocation5 + $0x18] sm:$0xff]  ;;  %v121_v13 = vld [vmem:[#allocation5 + $0x10] sm:$0xff] }
  0x1b   :  { %141 = vmatpush.msra.mxu0 %v132_v2  ;;  %v120_v14 = vld [vmem:[#allocation5 + $0x8] sm:$0xff]  ;;  %v119_v15 = vld [vmem:[#allocation5] sm:$0xff]  ;;  %v756_v18 = vld [vmem:[#allocation2 + $0x10] sm:$0xff] }
  0x1c   :  { %v750_v16 = vld [vmem:[#allocation2] sm:$0xff]  ;;  %v753_v17 = vld [vmem:[#allocation2 + $0x8] sm:$0xff]  ;;  %v759_v19 = vld [vmem:[#allocation2 + $0x18] sm:$0xff] }
  0x1d   :  { %142 = vmatpush.msra.mxu0 %v131_v3  ;;  %v211_v20 = vld [vmem:[#allocation7 + $0x78] sm:$0xff]  ;;  %v210_v21 = vld [vmem:[#allocation7 + $0x70] sm:$0xff]  ;;  %v209_v22 = vld [vmem:[#allocation7 + $0x68] sm:$0xff] }
  0x1e   :  { %216 = vmatpush.msra.mxu1 %v211_v20  ;;  %v208_v23 = vld [vmem:[#allocation7 + $0x60] sm:$0xff]  ;;  %v207_v25 = vld [vmem:[#allocation7 + $0x58] sm:$0xff]  ;;  %v206_v26 = vld [vmem:[#allocation7 + $0x50] sm:$0xff] }
  0x1f   :  { %143 = vmatpush.msra.mxu0 %v130_v4  ;;  %v762_v24 = vld [vmem:[#allocation2 + $0x20] sm:$0xff]  ;;  %v205_v27 = vld [vmem:[#allocation7 + $0x48] sm:$0xff]  ;;  %v203_v30 = vld [vmem:[#allocation7 + $0x38] sm:$0xff] }
  0x20   :  { %217 = vmatpush.msra.mxu1 %v210_v21  ;;  %v204_v28 = vld [vmem:[#allocation7 + $0x40] sm:$0xff]  ;;  %v765_v29 = vld [vmem:[#allocation2 + $0x28] sm:$0xff]  ;;  %v202_v31 = vld [vmem:[#allocation7 + $0x30] sm:$0xff] }
  0x21   :  { %144 = vmatpush.msra.mxu0 %v129_v5  ;;  %v201_v32 = vld [vmem:[#allocation7 + $0x28] sm:$0xff]  ;;  %v200_v33 = vld [vmem:[#allocation7 + $0x20] sm:$0xff]  ;;  %v768_v34 = vld [vmem:[#allocation2 + $0x30] sm:$0xff] }
  0x22   :  { %218 = vmatpush.msra.mxu1 %v209_v22  ;;  %v771_v35 = vld [vmem:[#allocation2 + $0x38] sm:$0xff]  ;;  %v198_v37 = vld [vmem:[#allocation7 + $0x10] sm:$0xff]  ;;  %v197_v38 = vld [vmem:[#allocation7 + $0x8] sm:$0xff] }
  0x23   :  { %145 = vmatpush.msra.mxu0 %v128_v6  ;;  %v199_v36 = vld [vmem:[#allocation7 + $0x18] sm:$0xff]  ;;  %v196_v39 = vld [vmem:[#allocation7] sm:$0xff]  ;;  %v287_v58 = vld [vmem:[#allocation8 + $0x70] sm:$0xff] }
  0x24   :  { %219 = vmatpush.msra.mxu1 %v208_v23  ;;  %v517_v40 = vld [vmem:[%s809_s2] ss:$0 sm:$0xff]  ;;  %v288_v57 = vld [vmem:[#allocation8 + $0x78] sm:$0xff]  ;;  %v286_v61 = vld [vmem:[#allocation8 + $0x68] sm:$0xff] }
  0x25   :  { %146 = vmatpush.msra.mxu0 %v127_v7  ;;  %293 = vmatpush.msra.mxu2 %v288_v57  ;;  %v285_v63 = vld [vmem:[#allocation8 + $0x60] sm:$0xff]  ;;  %v284_v1 = vld [vmem:[#allocation8 + $0x58] sm:$0xff]  ;;  %v283_v2 = vld [vmem:[#allocation8 + $0x50] sm:$0xff] }
  0x26   :  { %220 = vmatpush.msra.mxu1 %v207_v25  ;;  %v282_v5 = vld [vmem:[#allocation8 + $0x48] sm:$0xff]  ;;  %v281_v7 = vld [vmem:[#allocation8 + $0x40] sm:$0xff] }
  0x27   :  { %147 = vmatpush.msra.mxu0 %v126_v8  ;;  %294 = vmatpush.msra.mxu2 %v287_v58 }
  0x28   :  { %221 = vmatpush.msra.mxu1 %v206_v26  ;;  %v276_v26 = vld [vmem:[#allocation8 + $0x18] sm:$0xff] }
  0x29   :  { %148 = vmatpush.msra.mxu0 %v125_v9  ;;  %295 = vmatpush.msra.mxu2 %v286_v61  ;;  %v280_v9 = vld [vmem:[#allocation8 + $0x38] sm:$0xff] }
  0x2a   :  { %222 = vmatpush.msra.mxu1 %v205_v27  ;;  %v275_v27 = vld [vmem:[#allocation8 + $0x10] sm:$0xff] }
  0x2b   :  { %149 = vmatpush.msra.mxu0 %v124_v10  ;;  %296 = vmatpush.msra.mxu2 %v285_v63  ;;  %v279_v10 = vld [vmem:[#allocation8 + $0x30] sm:$0xff] }
  0x2c   :  { %223 = vmatpush.msra.mxu1 %v204_v28  ;;  %v274_v28 = vld [vmem:[#allocation8 + $0x8] sm:$0xff] }
  0x2d   :  { %150 = vmatpush.msra.mxu0 %v123_v11  ;;  %297 = vmatpush.msra.mxu2 %v284_v1 }
  0x2e   :  { %224 = vmatpush.msra.mxu1 %v203_v30  ;;  %v273_v30 = vld [vmem:[#allocation8] sm:$0xff] }
  0x2f   :  { %151 = vmatpush.msra.mxu0 %v122_v12  ;;  %298 = vmatpush.msra.mxu2 %v283_v2 }
  0x30   :  { %225 = vmatpush.msra.mxu1 %v202_v31  ;;  %v518_v31 = vld [vmem:[%s811_s4] ss:$0 sm:$0xff] }
  0x31   :  { %152 = vmatpush.msra.mxu0 %v121_v13  ;;  %299 = vmatpush.msra.mxu2 %v282_v5  ;;  %v278_v13 = vld [vmem:[#allocation8 + $0x28] sm:$0xff] }
  0x32   :  { %226 = vmatpush.msra.mxu1 %v201_v32 }
  0x33   :  { %153 = vmatpush.msra.mxu0 %v120_v14  ;;  %300 = vmatpush.msra.mxu2 %v281_v7  ;;  %v419_v7 = vld [vmem:[#allocation10 + $0x68] sm:$0xff] }
  0x34   :  { %227 = vmatpush.msra.mxu1 %v200_v33 }
  0x35   :  { %154 = vmatpush.msra.mxu0 %v119_v15  ;;  %301 = vmatpush.msra.mxu2 %v280_v9  ;;  %v277_v15 = vld [vmem:[#allocation8 + $0x20] sm:$0xff]  ;;  %v417_v9 = vld [vmem:[#allocation10 + $0x58] sm:$0xff] }
  0x36   :  { %155 = vmatmul.f32.vlgmr.msra.gmra.mxu0 %v750_v16  ;;  %228 = vmatpush.msra.mxu1 %v199_v36 }
  0x37   :  { %302 = vmatpush.msra.mxu2 %v279_v10 }
  0x38   :  { %229 = vmatpush.msra.mxu1 %v198_v37 }
  0x39   :  { %303 = vmatpush.msra.mxu2 %v278_v13  ;;  %v414_v13 = vld [vmem:[#allocation10 + $0x40] sm:$0xff] }
  0x3a   :  { %230 = vmatpush.msra.mxu1 %v197_v38 }
  0x3b   :  { %304 = vmatpush.msra.mxu2 %v277_v15  ;;  %v413_v15 = vld [vmem:[#allocation10 + $0x38] sm:$0xff] }
  0x3c   :  { %231 = vmatpush.msra.mxu1 %v196_v39 }
  0x3d   :  { %305 = vmatpush.msra.mxu2 %v276_v26 }
  0x3e   :  { %158 = vmatmul.f32.gmra.mxu0 %v753_v17 }
  0x3f   :  { %306 = vmatpush.msra.mxu2 %v275_v27 }
  0x41   :  { %307 = vmatpush.msra.mxu2 %v274_v28  ;;  %v411_v28 = vld [vmem:[#allocation10 + $0x28] sm:$0xff] }
  0x43   :  { %308 = vmatpush.msra.mxu2 %v273_v30 }
  0x46   :  { %161 = vmatmul.f32.gmra.mxu0 %v756_v18 }
  0x4e   :  { %164 = vmatmul.f32.gmra.mxu0 %v759_v19 }
  0x56   :  { %167 = vmatmul.f32.gmra.mxu0 %v762_v24 }
  0x5e   :  { %170 = vmatmul.f32.gmra.mxu0 %v765_v29 }
  0x66   :  { %173 = vmatmul.f32.gmra.mxu0 %v768_v34 }
  0x6e   :  { %176 = vmatmul.f32.gmra.mxu0 %v771_v35 }
  0xb3   :  { %v156_v41 = vpop.f32.mrf.mxu0 }
  0xb4   :  { %v157_v42 = vadd.f32 %v517_v40, %v156_v41 }
  0xb6   :  { %v180_v43 = vmul.f32 0.01, %v157_v42 }
  0xb8   :  { %v188_v44 = vmax.f32 %v157_v42, %v180_v43 }
  0xba   :  { %232 = vmatmul.f32.vlgmr.msra.gmra.mxu1 %v188_v44 }
  0xbb   :  { %v159_v45 = vpop.f32.mrf.mxu0 }
  0xbc   :  { %v160_v46 = vadd.f32 %v517_v40, %v159_v45 }
  0xbe   :  { %v181_v47 = vmul.f32 0.01, %v160_v46 }
  0xc0   :  { %v189_v48 = vmax.f32 %v160_v46, %v181_v47 }
  0xc2   :  { %235 = vmatmul.f32.gmra.mxu1 %v189_v48 }
  0xc3   :  { %v162_v49 = vpop.f32.mrf.mxu0 }
  0xc4   :  { %v163_v50 = vadd.f32 %v517_v40, %v162_v49 }
  0xc6   :  { %v182_v51 = vmul.f32 0.01, %v163_v50 }
  0xc8   :  { %v190_v52 = vmax.f32 %v163_v50, %v182_v51 }
  0xca   :  { %238 = vmatmul.f32.gmra.mxu1 %v190_v52 }
  0xcb   :  { %v165_v53 = vpop.f32.mrf.mxu0 }
  0xcc   :  { %v166_v54 = vadd.f32 %v517_v40, %v165_v53 }
  0xce   :  { %v183_v55 = vmul.f32 0.01, %v166_v54 }
  0xd0   :  { %v191_v56 = vmax.f32 %v166_v54, %v183_v55 }
  0xd2   :  { %241 = vmatmul.f32.gmra.mxu1 %v191_v56 }
  0xd3   :  { %v168_v59 = vpop.f32.mrf.mxu0 }
  0xd4   :  { %v169_v60 = vadd.f32 %v517_v40, %v168_v59 }
  0xd6   :  { %v184_v62 = vmul.f32 0.01, %v169_v60 }
  0xd8   :  { %v192_v0 = vmax.f32 %v169_v60, %v184_v62 }
  0xda   :  { %244 = vmatmul.f32.gmra.mxu1 %v192_v0 }
  0xdb   :  { %v171_v3 = vpop.f32.mrf.mxu0 }
  0xdc   :  { %v172_v4 = vadd.f32 %v517_v40, %v171_v3 }
  0xde   :  { %v185_v6 = vmul.f32 0.01, %v172_v4 }
  0xe0   :  { %v193_v8 = vmax.f32 %v172_v4, %v185_v6  ;;  %v421_v4 = vld [vmem:[#allocation10 + $0x78] sm:$0xff]  ;;  %v420_v6 = vld [vmem:[#allocation10 + $0x70] sm:$0xff] }
  0xe1   :  { %449 = vmatpush.msra.mxu3 %v421_v4 }
  0xe2   :  { %247 = vmatmul.f32.gmra.mxu1 %v193_v8  ;;  %v418_v8 = vld [vmem:[#allocation10 + $0x60] sm:$0xff] }
  0xe3   :  { %v174_v11 = vpop.f32.mrf.mxu0  ;;  %450 = vmatpush.msra.mxu3 %v420_v6 }
  0xe4   :  { %v175_v12 = vadd.f32 %v517_v40, %v174_v11  ;;  %v416_v11 = vld [vmem:[#allocation10 + $0x50] sm:$0xff] }
  0xe5   :  { %451 = vmatpush.msra.mxu3 %v419_v7 }
  0xe6   :  { %v186_v14 = vmul.f32 0.01, %v175_v12 }
  0xe7   :  { %452 = vmatpush.msra.mxu3 %v418_v8 }
  0xe8   :  { %v194_v20 = vmax.f32 %v175_v12, %v186_v14  ;;  %v415_v12 = vld [vmem:[#allocation10 + $0x48] sm:$0xff]  ;;  %v783_v14 = vld [vmem:[%s813_s6] ss:$0 sm:$0xff] }
  0xe9   :  { %453 = vmatpush.msra.mxu3 %v417_v9 }
  0xea   :  { %250 = vmatmul.f32.gmra.mxu1 %v194_v20 }
  0xeb   :  { %v177_v21 = vpop.f32.mrf.mxu0  ;;  %454 = vmatpush.msra.mxu3 %v416_v11 }
  0xec   :  { %v178_v22 = vadd.f32 %v517_v40, %v177_v21 }
  0xed   :  { %455 = vmatpush.msra.mxu3 %v415_v12 }
  0xee   :  { %v187_v23 = vmul.f32 0.01, %v178_v22 }
  0xef   :  { %456 = vmatpush.msra.mxu3 %v414_v13 }
  0xf0   :  { %v195_v25 = vmax.f32 %v178_v22, %v187_v23  ;;  %v412_v23 = vld [vmem:[#allocation10 + $0x30] sm:$0xff] }
  0xf1   :  { %457 = vmatpush.msra.mxu3 %v413_v15 }
  0xf2   :  { %253 = vmatmul.f32.gmra.mxu1 %v195_v25 }
  0xf3   :  { %458 = vmatpush.msra.mxu3 %v412_v23 }
  0xf5   :  { %459 = vmatpush.msra.mxu3 %v411_v28 }
 0x137   :  { %v233_v32 = vpop.f32.mrf.mxu1 }
 0x138   :  { %v234_v33 = vadd.f32 %v518_v31, %v233_v32  ;;  %v410_v32 = vld [vmem:[#allocation10 + $0x20] sm:$0xff] }
 0x139   :  { %460 = vmatpush.msra.mxu3 %v410_v32 }
 0x13a   :  { %v257_v36 = vmul.f32 0.01, %v234_v33 }
 0x13c   :  { %v265_v37 = vmax.f32 %v234_v33, %v257_v36 }
 0x13e   :  { %309 = vmatmul.f32.vlgmr.msra.gmra.mxu2 %v265_v37  ;;  %v409_v37 = vld [vmem:[#allocation10 + $0x18] sm:$0xff] }
 0x13f   :  { %v236_v38 = vpop.f32.mrf.mxu1  ;;  %461 = vmatpush.msra.mxu3 %v409_v37 }
 0x140   :  { %v237_v39 = vadd.f32 %v518_v31, %v236_v38 }
 0x142   :  { %v258_v40 = vmul.f32 0.01, %v237_v39 }
 0x144   :  { %v266_v41 = vmax.f32 %v237_v39, %v258_v40  ;;  %v408_v39 = vld [vmem:[#allocation10 + $0x10] sm:$0xff] }
 0x145   :  { %462 = vmatpush.msra.mxu3 %v408_v39 }
 0x146   :  { %312 = vmatmul.f32.gmra.mxu2 %v266_v41 }
 0x147   :  { %v239_v42 = vpop.f32.mrf.mxu1 }
 0x148   :  { %v240_v43 = vadd.f32 %v518_v31, %v239_v42 }
 0x14a   :  { %v259_v44 = vmul.f32 0.01, %v240_v43 }
 0x14c   :  { %v267_v45 = vmax.f32 %v240_v43, %v259_v44  ;;  %v407_v43 = vld [vmem:[#allocation10 + $0x8] sm:$0xff] }
 0x14d   :  { %463 = vmatpush.msra.mxu3 %v407_v43 }
 0x14e   :  { %315 = vmatmul.f32.gmra.mxu2 %v267_v45 }
 0x14f   :  { %v242_v46 = vpop.f32.mrf.mxu1 }
 0x150   :  { %v243_v47 = vadd.f32 %v518_v31, %v242_v46 }
 0x152   :  { %v260_v48 = vmul.f32 0.01, %v243_v47 }
 0x154   :  { %v268_v49 = vmax.f32 %v243_v47, %v260_v48  ;;  %v406_v48 = vld [vmem:[#allocation10] sm:$0xff] }
 0x155   :  { %464 = vmatpush.msra.mxu3 %v406_v48 }
 0x156   :  { %318 = vmatmul.f32.gmra.mxu2 %v268_v49 }
 0x157   :  { %v245_v50 = vpop.f32.mrf.mxu1 }
 0x158   :  { %v246_v51 = vadd.f32 %v518_v31, %v245_v50 }
 0x15a   :  { %v261_v52 = vmul.f32 0.01, %v246_v51 }
 0x15c   :  { %v269_v53 = vmax.f32 %v246_v51, %v261_v52 }
 0x15e   :  { %321 = vmatmul.f32.gmra.mxu2 %v269_v53 }
 0x15f   :  { %v248_v54 = vpop.f32.mrf.mxu1 }
 0x160   :  { %v249_v55 = vadd.f32 %v518_v31, %v248_v54 }
 0x162   :  { %v262_v56 = vmul.f32 0.01, %v249_v55 }
 0x164   :  { %v270_v57 = vmax.f32 %v249_v55, %v262_v56 }
 0x166   :  { %324 = vmatmul.f32.gmra.mxu2 %v270_v57 }
 0x167   :  { %v251_v58 = vpop.f32.mrf.mxu1 }
 0x168   :  { %v252_v59 = vadd.f32 %v518_v31, %v251_v58 }
 0x16a   :  { %v263_v60 = vmul.f32 0.01, %v252_v59 }
 0x16c   :  { %v271_v61 = vmax.f32 %v252_v59, %v263_v60 }
 0x16e   :  { %327 = vmatmul.f32.gmra.mxu2 %v271_v61 }
 0x16f   :  { %v254_v62 = vpop.f32.mrf.mxu1 }
 0x170   :  { %v255_v63 = vadd.f32 %v518_v31, %v254_v62 }
 0x172   :  { %v264_v0 = vmul.f32 0.01, %v255_v63 }
 0x174   :  { %v272_v1 = vmax.f32 %v255_v63, %v264_v0 }
 0x176   :  { %330 = vmatmul.f32.gmra.mxu2 %v272_v1 }
 0x1c1   :  { %v310_v2 = vpop.f32.mrf.mxu2 }
 0x1c2   :  { %v311_v25 = vadd.f32 %v783_v14, %v310_v2 }
 0x1c4   :  { %v334_v33 = vmul.f32 0.01, %v311_v25 }
 0x1c6   :  { %v342_v44 = vmax.f32 %v311_v25, %v334_v33 }
 0x1c8   :  { %v350_v52 = vadd.f32 %v342_v44, %v750_v16 }
 0x1c9   :  { %v313_v3 = vpop.f32.mrf.mxu2 }
 0x1ca   :  { %v314_v20 = vadd.f32 %v783_v14, %v313_v3  ;;  %v358_v60 = vrot.slane %v350_v52, 4 }
 0x1cc   :  { %v335_v30 = vmul.f32 0.01, %v314_v20  ;;  %v359_v1 = vadd.f32 %v358_v60, %v350_v52 }
 0x1ce   :  { %v343_v40 = vmax.f32 %v314_v20, %v335_v30  ;;  %v360_v7 = vrot.slane %v359_v1, 2 }
 0x1d0   :  { %v351_v49 = vadd.f32 %v343_v40, %v753_v17 }
 0x1d1   :  { %v316_v5 = vpop.f32.mrf.mxu2 }
 0x1d2   :  { %v317_v21 = vadd.f32 %v783_v14, %v316_v5  ;;  %v364_v56 = vrot.slane %v351_v49, 4 }
 0x1d4   :  { %v336_v31 = vmul.f32 0.01, %v317_v21  ;;  %v365_v63 = vadd.f32 %v364_v56, %v351_v49 }
 0x1d6   :  { %v344_v41 = vmax.f32 %v317_v21, %v336_v31  ;;  %v366_v4 = vrot.slane %v365_v63, 2 }
 0x1d8   :  { %v352_v51 = vadd.f32 %v344_v41, %v756_v18  ;;  %v367_v12 = vadd.f32 %v366_v4, %v365_v63 }
 0x1d9   :  { %v319_v10 = vpop.f32.mrf.mxu2 }
 0x1da   :  { %v320_v26 = vadd.f32 %v783_v14, %v319_v10  ;;  %v370_v58 = vrot.slane %v352_v51, 4  ;;  %v368_v28 = vrot.slane %v367_v12, 1 }
 0x1dc   :  { %v337_v36 = vmul.f32 0.01, %v320_v26  ;;  %v371_v16 = vadd.f32 %v370_v58, %v352_v51  ;;  %v520_v58 = vld [vmem:[%s815_s8] ss:$0 sm:$0xff]  ;;  %s496_s8 = sshll.u32 %s816_s9, 4  ;;  %s497_s8 = int_to_ptr.hbm [resolvable:$true] %s496_s8 }
 0x1de   :  { %v345_v45 = vmax.f32 %v320_v26, %v337_v36 }
 0x1e0   :  { %v353_v53 = vadd.f32 %v345_v45, %v759_v19 }
 0x1e1   :  { %v322_v22 = vpop.f32.mrf.mxu2 }
 0x1e2   :  { %v323_v27 = vadd.f32 %v783_v14, %v322_v22  ;;  %v376_v61 = vrot.slane %v353_v53, 4  ;;  %v361_v22 = vadd.f32 %v360_v7, %v359_v1 }
 0x1e4   :  { %v338_v38 = vmul.f32 0.01, %v323_v27  ;;  %v377_v19 = vadd.f32 %v376_v61, %v353_v53  ;;  %v362_v33 = vrot.slane %v361_v22, 1 }
 0x1e6   :  { %v346_v47 = vmax.f32 %v323_v27, %v338_v38  ;;  %v378_v8 = vrot.slane %v377_v19, 2  ;;  %v369_v38 = vadd.f32 %v368_v28, %v367_v12  ;;  %v363_v43 = vadd.f32 %v362_v33, %v361_v22 }
 0x1e8   :  { %v354_v55 = vadd.f32 %v346_v47, %v762_v24  ;;  %v379_v23 = vadd.f32 %v378_v8, %v377_v19  ;;  %v435_v48 = vsel %vm434_vm0, %v369_v38, %v363_v43 }
 0x1e9   :  { %v325_v42 = vpop.f32.mrf.mxu2 }
 0x1ea   :  { %v326_v46 = vadd.f32 %v783_v14, %v325_v42  ;;  %v382_v62 = vrot.slane %v354_v55, 4  ;;  %v380_v36 = vrot.slane %v379_v23, 1 }
 0x1ec   :  { %v339_v50 = vmul.f32 0.01, %v326_v46  ;;  %v383_v3 = vadd.f32 %v382_v62, %v354_v55  ;;  %v381_v44 = vadd.f32 %v380_v36, %v379_v23 }
 0x1ee   :  { %v347_v54 = vmax.f32 %v326_v46, %v339_v50  ;;  %v384_v11 = vrot.slane %v383_v3, 2 }
 0x1f0   :  { %v355_v57 = vadd.f32 %v347_v54, %v765_v29  ;;  %v372_v29 = vrot.slane %v371_v16, 2  ;;  %v385_v27 = vadd.f32 %v384_v11, %v383_v3 }
 0x1f1   :  { %v328_v59 = vpop.f32.mrf.mxu2 }
 0x1f2   :  { %v329_v17 = vadd.f32 %v783_v14, %v328_v59  ;;  %v388_v18 = vrot.slane %v355_v57, 4  ;;  %v373_v21 = vadd.f32 %v372_v29, %v371_v16  ;;  %v386_v37 = vrot.slane %v385_v27, 1 }
 0x1f4   :  { %v340_v0 = vmul.f32 0.01, %v329_v17  ;;  %v389_v24 = vadd.f32 %v388_v18, %v355_v57  ;;  %v374_v31 = vrot.slane %v373_v21, 1  ;;  %v387_v46 = vadd.f32 %v386_v37, %v385_v27 }
 0x1f6   :  { %v348_v2 = vmax.f32 %v329_v17, %v340_v0  ;;  %v390_v13 = vrot.slane %v389_v24, 2  ;;  %v375_v41 = vadd.f32 %v374_v31, %v373_v21 }
 0x1f8   :  { %v356_v5 = vadd.f32 %v348_v2, %v768_v34  ;;  %v391_v34 = vadd.f32 %v390_v13, %v389_v24  ;;  %v437_v50 = vsel %vm436_vm1, %v375_v41, %v435_v48 }
 0x1f9   :  { %v331_v6 = vpop.f32.mrf.mxu2  ;;  %v439_v52 = vsel %vm438_vm2, %v381_v44, %v437_v50 }
 0x1fa   :  { %v394_v9 = vrot.slane %v356_v5, 4  ;;  %v332_v10 = vadd.f32 %v783_v14, %v331_v6  ;;  %v392_v39 = vrot.slane %v391_v34, 1  ;;  %v441_v53 = vsel %vm440_vm3, %v387_v46, %v439_v52 }
 0x1fc   :  { %v395_v15 = vadd.f32 %v394_v9, %v356_v5  ;;  %v341_v20 = vmul.f32 0.01, %v332_v10  ;;  %v393_v47 = vadd.f32 %v392_v39, %v391_v34 }
 0x1fe   :  { %v396_v25 = vrot.slane %v395_v15, 2  ;;  %v349_v26 = vmax.f32 %v332_v10, %v341_v20  ;;  %v443_v55 = vsel %vm442_vm4, %v393_v47, %v441_v53 }
 0x200   :  { %v357_v30 = vadd.f32 %v349_v26, %v771_v35  ;;  %v397_v32 = vadd.f32 %v396_v25, %v395_v15 }
 0x202   :  { %v400_v14 = vrot.slane %v357_v30, 4  ;;  %v398_v42 = vrot.slane %v397_v32, 1 }
 0x204   :  { %v401_v40 = vadd.f32 %v400_v14, %v357_v30  ;;  %v399_v49 = vadd.f32 %v398_v42, %v397_v32 }
 0x206   :  { %v402_v45 = vrot.slane %v401_v40, 2  ;;  %v445_v56 = vsel %vm444_vm5, %v399_v49, %v443_v55 }
 0x208   :  { %v403_v35 = vadd.f32 %v402_v45, %v401_v40 }
 0x20a   :  { %v404_v51 = vrot.slane %v403_v35, 1 }
 0x20c   :  { %v405_v54 = vadd.f32 %v404_v51, %v403_v35 }
 0x20e   :  { %v447_v57 = vsel %vm446_vm6, %v405_v54, %v445_v56 }
 0x20f   :  { %465 = vmatmul.f32.vlgmr.msra.gmra.mxu3 %v447_v57 }
 0x292   :  { %v466_v59 = vpop.f32.mrf.mxu3 }
 0x293   :  { %v467_v60 = vadd.f32 %v520_v58, %v466_v59 }
 0x295   :  { %v508_v61 = vmul.f32 -1.442695, %v467_v60 }
 0x297   :  { %521 = vpow2.f32 %v508_v61 }
 0x29d   :  { %v522_v17 = vpop.eup %521 }
 0x29e   :  { %v472_v62 = vadd.f32 1.0, %v522_v17 }
 0x2a0   :  { %523 = vrcp.f32 %v472_v62  ;;  %v484_v16 = vand.u32 2147483648, %v472_v62  ;;  %v482_v19 = vand.u32 2147483647, %v472_v62  ;;  %vm478_vm8 = vweird.f32 %v472_v62 }
 0x2a2   :  { %v485_v3 = vor.u32 1.1754944e-38, %v484_v16  ;;  %vm483_vm10 = vcmp.eq.f32.partialorder %v482_v19, 8.507059e+37 }
 0x2a6   :  { %v524_v63 = vpop.eup %523 }
 0x2a7   :  { %v474_v18 = vmul.f32 %v524_v63, %v472_v62  ;;  %vm479_vm7 = vweird.f32 %v524_v63 }
 0x2a8   :  { %vm480_vm9 = vmor %vm478_vm8, %vm479_vm7 }
 0x2a9   :  { %v475_v0 = vsub.f32 1.0, %v474_v18 }
 0x2ab   :  { %v476_v1 = vmul.f32 %v524_v63, %v475_v0 }
 0x2ad   :  { %v477_v2 = vadd.f32 %v524_v63, %v476_v1 }
 0x2af   :  { %v481_v4 = vsel %vm480_vm9, %v524_v63, %v477_v2 }
 0x2b0   :  { %v486_v24 = vsel %vm483_vm10, %v485_v3, %v481_v4 }
 0x2b1   :  { %488 = vst [vmem:[#allocation11] sm:$0xff] %v486_v24 }
 0x2b2   :  { %499 = dma.vmem_to_hbm [thread:$0]  %s495_s16, 128, %s497_s8, [#allocation4]  }
 0x2b3   :  { %675 = dma.done.wait [#allocation4], 128  }
 0x2b4   :  { %676 = vsyncadd [#allocation4], 4294967168 }
 0x2b5   :  { %504 = vsyncpa [#allocation3], 1 }
 0x2b6   :  { %505 = vsyncpa [#allocation6], 1 }
 0x2b7   :  { %506 = vsyncpa [#allocation9], 1 }
 0x2b8   :  { %507 = vsyncpa [#allocation4], 1 }

</bundles_post_ra>
